<compile_context>
chip_gen: v5e
topology: v5e:2x2
jax: 0.10.0
libtpu: 0.0.40
codegen_flags: <defaults>
</compile_context>

<pallas_src>
import math

import jax
import jax.numpy as jnp
from jax.experimental import pallas as pl
from jax.experimental.pallas import tpu as pltpu

_LANE = 128


def _attention_kernel(enc_ref, wref_ref, wencT_ref, v_ref, out_ref):
    # enc_ref  : (BB, TILE_S, H)  streamed enc tile (bf16 or f32)
    # wref_ref : (BB, 1, H)       precomputed ref @ W_ref^T rows (f32)
    # wencT_ref: (H, H)           W_enc^T, loop-invariant (VMEM resident)
    # v_ref    : (1, 1, H)        V (f32)
    # out_ref  : (BB, TILE_S)     lane-dense logits tile (f32)
    BB, TILE_S, H = enc_ref.shape

    # One large MXU matmul over all BB*TILE_S rows; f32 accumulation.
    enc2d = enc_ref[...].reshape(BB * TILE_S, H)
    h = jnp.dot(enc2d, wencT_ref[...], preferred_element_type=jnp.float32)

    # Broadcast the per-batch ref projection over the seq tile; tanh on the EUP.
    t = jnp.tanh(h.reshape(BB, TILE_S, H) + wref_ref[...])        # (BB, TILE_S, H) f32

    # V contraction: VPU broadcast-multiply + lane reduce (no XLU transpose of t).
    logits = jnp.sum(t * v_ref[...], axis=-1)                     # (BB, TILE_S) f32
    out_ref[...] = logits.astype(out_ref.dtype)


def _vmem_capacity_bytes():
    try:
        return int(pltpu.get_tpu_info().vmem_capacity_bytes)
    except Exception:
        return 64 * 1024 * 1024  # v7x physical VMEM; conservative floor


def _pick_tiles(B, S, H, enc_bytes, vmem_budget):
    """Pick (BB, TILE_S) so double-buffered blocks + f32 intermediates fit the budget."""
    BB = 8 if B >= 8 else B

    # Resident, seq-tile-independent usage: double-buffered W_enc^T, wref and V tiles.
    fixed = 2 * H * H * enc_bytes + 2 * BB * H * 4 + 2 * H * 4
    # Per-seq-position usage: double-buffered enc stream + f32 intermediates (h, t)
    # + double-buffered f32 output rows.
    per_row = BB * H * (2 * enc_bytes + 2 * 4) + 2 * BB * 4

    avail = max(vmem_budget - fixed, per_row * _LANE)  # never below one lane tile
    tile = avail // per_row

    if S <= _LANE:
        tile_s = S                                      # full dim -> always legal block
    else:
        tile_s = max(_LANE, (min(tile, 2048) // _LANE) * _LANE)   # 128-aligned, <= 2048
        tile_s = min(tile_s, max(_LANE, (S // _LANE) * _LANE))    # don't exceed S
    return BB, int(tile_s)


def attention_forward(enc, ref, W_enc, W_ref, V, *, compute_dtype=jnp.bfloat16):
    """enc: [B,S,H], ref: [B,H], W_enc/W_ref: [H,H], V: [H] -> [B,S] f32 logits."""
    B, S, H = enc.shape
    enc_bytes = jnp.dtype(compute_dtype).itemsize

    vmem_cap = _vmem_capacity_bytes()
    vmem_budget = vmem_cap // 2                         # headroom below physical VMEM
    BB, TILE_S = _pick_tiles(B, S, H, enc_bytes, vmem_budget)

    n_b = pl.cdiv(B, BB)
    n_s = pl.cdiv(S, TILE_S)
    # v7x: keep >= 2 grid steps so both TensorCores get work when possible.
    if n_b * n_s < 2 and S >= 2 * _LANE:
        TILE_S = max(_LANE, ((TILE_S // 2) // _LANE) * _LANE)
        n_s = pl.cdiv(S, TILE_S)

    # Loop-invariant prep done once in XLA (outside the grid loop).
    enc_c = enc.astype(compute_dtype)
    W_encT = jnp.asarray(W_enc).astype(compute_dtype).T            # (H, H) pre-transposed
    wref = jnp.dot(ref, jnp.asarray(W_ref).T).astype(jnp.float32).reshape(B, 1, H)
    v_row = jnp.asarray(V).astype(jnp.float32).reshape(1, 1, H)

    cost = pl.CostEstimate(
        flops=2 * B * S * H * H + 2 * B * S * H,
        transcendentals=B * S * H,
        bytes_accessed=(B * S * H * enc_bytes + H * H * enc_bytes
                        + B * H * 4 + H * 4 + B * S * 4),
    )

    out = pl.pallas_call(
        _attention_kernel,
        out_shape=jax.ShapeDtypeStruct((B, S), jnp.float32),
        grid=(n_b, n_s),
        in_specs=[
            pl.BlockSpec((BB, TILE_S, H), lambda b, j: (b, j, 0)),   # enc tile (pipelined)
            pl.BlockSpec((BB, 1, H), lambda b, j: (b, 0, 0)),        # wref rows (per batch block)
            pl.BlockSpec((H, H), lambda b, j: (0, 0)),               # W_enc^T  (resident)
            pl.BlockSpec((1, 1, H), lambda b, j: (0, 0, 0)),         # V        (resident)
        ],
        out_specs=pl.BlockSpec((BB, TILE_S), lambda b, j: (b, j)),
        compiler_params=pltpu.CompilerParams(
            dimension_semantics=("parallel", "parallel"),
            vmem_limit_bytes=int(vmem_budget)),
        cost_estimate=cost,
    )(enc_c, wref, W_encT, v_row)

    return out


def attention_reference(enc, ref, W_enc, W_ref, V):
    """Pure-JAX reference matching the PyTorch forward exactly."""
    Wenc = jnp.einsum('ak,bjk->bja', W_enc, enc)
    Wref = jnp.einsum('ak,bk->ba', W_ref, ref)[:, None, :]
    return jnp.einsum('k,ijk->ij', V, jnp.tanh(Wenc + Wref))


if __name__ == "__main__":
    B, S, H = 2, 8, 32

    key = jax.random.PRNGKey(0)
    k_enc, k_ref, k_we, k_wr, k_v = jax.random.split(key, 5)

    bound = 1.0 / math.sqrt(H)
    # Deterministic parameter init mirroring uniform_(-1/sqrt(H), 1/sqrt(H))
    W_enc = jax.random.uniform(k_we, (H, H), jnp.float32, -bound, bound)
    W_ref = jax.random.uniform(k_wr, (H, H), jnp.float32, -bound, bound)
    V = jax.random.uniform(k_v, (H,), jnp.float32, -bound, bound)

    enc = jax.random.normal(k_enc, (B, S, H), jnp.float32)
    ref = jax.random.normal(k_ref, (B, H), jnp.float32)

    expected = attention_reference(enc, ref, W_enc, W_ref, V)

    # f32 path: strict parity with the PyTorch reference.
    out_f32 = jax.block_until_ready(
        attention_forward(enc, ref, W_enc, W_ref, V, compute_dtype=jnp.float32))
    assert out_f32.shape == (B, S)
    assert jnp.allclose(out_f32, expected, atol=1e-5, rtol=1e-5), "f32 mismatch vs reference"

    # bf16-stream path (production default): tolerance loosened for the bf16 cast.
    out_bf16 = jax.block_until_ready(attention_forward(enc, ref, W_enc, W_ref, V))
    assert out_bf16.shape == (B, S)
    assert jnp.allclose(out_bf16, expected, atol=3e-2, rtol=3e-2), "bf16 mismatch vs reference"

    print("KERNEL_OK")
</pallas_src>

<mosaic_0001>
module attributes {stable_mosaic.version = 11 : i64} {
  func.func @_attention_kernel(%arg0: i32, %arg1: i32, %arg2: memref<2x8x32xf32, #tpu.memory_space<vmem>>, %arg3: memref<2x1x32xf32, #tpu.memory_space<vmem>>, %arg4: memref<32x32xf32, #tpu.memory_space<vmem>>, %arg5: memref<1x1x32xf32, #tpu.memory_space<vmem>>, %arg6: memref<2x8xf32, #tpu.memory_space<vmem>>) attributes {dimension_semantics = [#tpu.dimension_semantics<parallel>, #tpu.dimension_semantics<parallel>], iteration_bounds = array<i64: 1, 1>, scalar_prefetch = 0 : i64, scratch_operands = 0 : i64, tpu.core_type = #tpu.core_type<tc>, window_params = [{transform_indices = @transform_0, window_bounds = array<i64: 2, 8, 32>}, {transform_indices = @transform_1, window_bounds = array<i64: 2, 1, 32>}, {pipeline_mode = #tpu.pipeline_mode<synchronous>, transform_indices = @transform_2, window_bounds = array<i64: 32, 32>}, {pipeline_mode = #tpu.pipeline_mode<synchronous>, transform_indices = @transform_3, window_bounds = array<i64: 1, 1, 32>}, {transform_indices = @transform_4, window_bounds = array<i64: 2, 8>}]} {
    %c0 = arith.constant 0 : index
    %c0_0 = arith.constant 0 : index
    %c0_1 = arith.constant 0 : index
    %0 = vector.load %arg2[%c0, %c0_0, %c0_1] : memref<2x8x32xf32, #tpu.memory_space<vmem>>, vector<2x8x32xf32>
    %1 = vector.shape_cast %0 : vector<2x8x32xf32> to vector<16x32xf32>
    %c0_2 = arith.constant 0 : index
    %c0_3 = arith.constant 0 : index
    %2 = vector.load %arg4[%c0_2, %c0_3] : memref<32x32xf32, #tpu.memory_space<vmem>>, vector<32x32xf32>
    %cst = arith.constant dense<0.000000e+00> : vector<16x32xf32>
    %3 = tpu.matmul %1, %2, %cst {dimension_numbers = #tpu.dot_dimension_numbers<[1], [0], [0], [1], [0, 0, 1, 1], [], []>} : vector<16x32xf32>, vector<32x32xf32>, vector<16x32xf32> -> vector<16x32xf32>
    %4 = vector.shape_cast %3 : vector<16x32xf32> to vector<2x8x32xf32>
    %c0_4 = arith.constant 0 : index
    %c0_5 = arith.constant 0 : index
    %c0_6 = arith.constant 0 : index
    %5 = vector.load %arg3[%c0_4, %c0_5, %c0_6] : memref<2x1x32xf32, #tpu.memory_space<vmem>>, vector<2x1x32xf32>
    %6 = vector.broadcast %5 : vector<2x1x32xf32> to vector<2x8x32xf32>
    %7 = arith.addf %4, %6 : vector<2x8x32xf32>
    %8 = math.tanh %7 : vector<2x8x32xf32>
    %c0_7 = arith.constant 0 : index
    %c0_8 = arith.constant 0 : index
    %c0_9 = arith.constant 0 : index
    %9 = vector.load %arg5[%c0_7, %c0_8, %c0_9] : memref<1x1x32xf32, #tpu.memory_space<vmem>>, vector<1x1x32xf32>
    %10 = vector.broadcast %9 : vector<1x1x32xf32> to vector<2x8x32xf32>
    %11 = arith.mulf %8, %10 : vector<2x8x32xf32>
    %cst_10 = arith.constant dense<0.000000e+00> : vector<2x8xf32>
    %12 = vector.multi_reduction <add>, %11, %cst_10 [2] : vector<2x8x32xf32> to vector<2x8xf32>
    %c0_11 = arith.constant 0 : index
    %c0_12 = arith.constant 0 : index
    %13 = vector.load %arg6[%c0_11, %c0_12] : memref<2x8xf32, #tpu.memory_space<vmem>>, vector<2x8xf32>
    tpu.vector_store %arg6[%c0_11, %c0_12], %12 {strides = array<i32>} : memref<2x8xf32, #tpu.memory_space<vmem>>, vector<2x8xf32>,
    return
  }
  func.func @transform_0(%arg0: i32, %arg1: i32) -> (i32, i32, i32) {
    %c0_i32 = arith.constant 0 : i32
    %c0_i32_0 = arith.constant 0 : i32
    return %arg0, %arg1, %c0_i32 : i32, i32, i32
  }
  func.func @transform_1(%arg0: i32, %arg1: i32) -> (i32, i32, i32) {
    %c0_i32 = arith.constant 0 : i32
    %c0_i32_0 = arith.constant 0 : i32
    %c0_i32_1 = arith.constant 0 : i32
    return %arg0, %c0_i32, %c0_i32_0 : i32, i32, i32
  }
  func.func @transform_2(%arg0: i32, %arg1: i32) -> (i32, i32) {
    %c0_i32 = arith.constant 0 : i32
    %c0_i32_0 = arith.constant 0 : i32
    %c0_i32_1 = arith.constant 0 : i32
    return %c0_i32, %c0_i32_0 : i32, i32
  }
  func.func @transform_3(%arg0: i32, %arg1: i32) -> (i32, i32, i32) {
    %c0_i32 = arith.constant 0 : i32
    %c0_i32_0 = arith.constant 0 : i32
    %c0_i32_1 = arith.constant 0 : i32
    %c0_i32_2 = arith.constant 0 : i32
    return %c0_i32, %c0_i32_0, %c0_i32_1 : i32, i32, i32
  }
  func.func @transform_4(%arg0: i32, %arg1: i32) -> (i32, i32) {
    %c0_i32 = arith.constant 0 : i32
    return %arg0, %arg1 : i32, i32
  }
}

</mosaic_0001>

<bundles_post_ra>
// kernel: tpu_custom_call.1
= control target key start
LH: loop header
LB: loop body
LE: loop exit
PB: predicated region body
PF: predicated region fallthrough
CT: control target
= control target key end

     0   :  { %9 = vsyncpa [#allocation3], 0  ;;  %s329_s0 = inlined_call_operand.hbm [shape: f32[2,8,32], index: 0, kind: input, shape index: {}]   ;;  %s330_s1 = inlined_call_operand.hbm [shape: f32[2,1,32], index: 1, kind: input, shape index: {}]   ;;  %s331_s2 = inlined_call_operand.hbm [shape: f32[32,32], index: 2, kind: input, shape index: {}]   ;;  %s332_s3 = inlined_call_operand.vmem [shape: f32[1,1,32], index: 3, kind: input, shape index: {}]   ;;  %s333_s4 = inlined_call_operand.hbm [shape: f32[2,8], index: 4, kind: output, shape index: {}]  }
   0x1   :  { %10 = vsyncpa [#allocation6], 0  ;;  %s29_s17 = sshll.u32 %s330_s1, 4  ;;  %s30_s17 = int_to_ptr.hbm [resolvable:$true] %s29_s17 }
   0x2   :  { %11 = vsyncpa [#allocation4], 0  ;;  %s277_s18 = smov [#allocation5]   ;;  %s16_s22 = sshll.u32 %s329_s0, 4  ;;  %s17_s22 = int_to_ptr.hbm [resolvable:$true] %s16_s22 }
   0x3   :  { %s31_s19 = sshll.u32 %s277_s18, 4  ;;  %s278_s23 = smov 16   ;;  %s32_s19 = int_to_ptr.vmem [resolvable:$true] %s31_s19 }
   0x4   :  { %s279_s24 = smov 1   ;;  %s280_s25 = smov [#allocation2]  }
   0x5   :  { %37 = dma.hbm_to_vmem [thread:$0]  %s30_s17, 32, %s32_s19, [#allocation6], %s278_s23, %s278_s23, %s279_s24  }
   0x6   :  { %s18_s26 = sshll.u32 %s280_s25, 4  ;;  %s281_s27 = smov 128   ;;  %s19_s26 = int_to_ptr.vmem [resolvable:$true] %s18_s26 }
   0x7   :  { %s282_s28 = smov 8   ;;  %s42_s30 = sshll.u32 %s331_s2, 4  ;;  %s43_s30 = int_to_ptr.hbm [resolvable:$true] %s42_s30 }
   0x8   :  { %24 = dma.hbm_to_vmem [thread:$0]  %s17_s22, 256, %s19_s26, [#allocation3], %s281_s27, %s281_s27, %s282_s28  }
   0x9   :  { %s283_s5 = smov [#allocation7]  }
   0xa   :  { %s44_s6 = sshll.u32 %s283_s5, 4  ;;  %s45_s6 = int_to_ptr.vmem [resolvable:$true] %s44_s6 }
   0xb   :  { %50 = dma.hbm_to_vmem [thread:$0]  %s43_s30, 512, %s45_s6, [#allocation6], %s281_s27, %s281_s27, %s282_s28  }
   0xc   :  { %271 = dma.done.wait [#allocation3], 256  }
   0xd   :  { %272 = vsyncadd [#allocation3], 4294967040 }
   0xe   :  { %273 = dma.done.wait [#allocation6], 544  }
   0xf   :  { %274 = vsyncadd [#allocation6], 4294966752  ;;  %v70_v0 = vld [vmem:[#allocation7 + $0x18] sm:$0xff]  ;;  %v69_v1 = vld [vmem:[#allocation7 + $0x10] sm:$0xff]  ;;  %vm71_vm0 = vcmask 261120   ;;  %v127_v20 = vlaneseq  ;;  %s284_s7 = smov [#allocation8]  }
  0x10   :  { %90 = vmatpush.msra.mxu0 %v70_v0  ;;  %v68_v2 = vld [vmem:[#allocation7 + $0x8] sm:$0xff]  ;;  %156 = vmatpush.msra.mxu1 %v70_v0  ;;  %v67_v3 = vld [vmem:[#allocation7] sm:$0xff]  ;;  %v66_v5 = vld [vmem:[#allocation2 + $0x8] sm:$0xff]  ;;  %s141_s8 = sshll.u32 %s284_s7, 4  ;;  %s143_s11 = sshll.u32 %s333_s4, 4  ;;  %vm131_vm1 = vcmask 1041409   ;;  %s142_s8 = int_to_ptr.vmem [resolvable:$true] %s141_s8  ;;  %s144_s11 = int_to_ptr.hbm [resolvable:$true] %s143_s11 }
  0x11   :  { %v65_v4 = vld [vmem:[#allocation2] sm:$0xff]  ;;  %v168_v6 = vld [vmem:[#allocation5] ss:$0 sm:$0xff]  ;;  %v169_v7 = vld [vmem:[#allocation5 + $0x1] ss:$0 sm:$0xff]  ;;  %v128_v21 = vand.u32 127, %v127_v20 }
  0x12   :  { %91 = vmatpush.msra.mxu0 %v69_v1  ;;  %157 = vmatpush.msra.mxu1 %v69_v1  ;;  %v170_v12 = vld [vmem:[%s332_s3] ss:$0 sm:$0xff]  ;;  %vm134_vm2 = vcmask 58368  }
  0x14   :  { %92 = vmatpush.msra.mxu0 %v68_v2  ;;  %158 = vmatpush.msra.mxu1 %v68_v2 }
  0x16   :  { %93 = vmatpush.msra.mxu0 %v67_v3  ;;  %159 = vmatpush.msra.mxu1 %v67_v3 }
  0x17   :  { %154 = vmatmul.msk.f32.vlgmr.msra.gmra.mxu0 %vm71_vm0, %v65_v4  ;;  %155 = vmatmul.msk.f32.vlgmr.msra.gmra.mxu1 %vm71_vm0, %v66_v5 }
  0x94   :  { %v95_v8 = vpop.f32.mrf.mxu0  ;;  %v98_v9 = vpop.f32.mrf.mxu1 }
  0x95   :  { %v109_v10 = vadd.f32 %v168_v6, %v95_v8  ;;  %v110_v11 = vadd.f32 %v169_v7, %v98_v9 }
  0x97   :  { %171 = vtanh.f32 %v109_v10 }
  0x98   :  { %173 = vtanh.f32 %v110_v11 }
  0x9d   :  { %v172_v13 = vpop.eup %171 }
  0x9e   :  { %v117_v14 = vmul.f32 %v172_v13, %v170_v12  ;;  %v174_v15 = vpop.eup %173 }
  0x9f   :  { %v118_v17 = vmul.f32 %v174_v15, %v170_v12 }
  0xa0   :  { %v119_v16 = vsel %vm71_vm0, %v117_v14, 0.0 }
  0xa1   :  { %120 = vadd.xlane.f32.xlu0 %v119_v16  ;;  %v122_v18 = vsel %vm71_vm0, %v118_v17, 0.0 }
  0xa9   :  { %123 = vadd.xlane.f32.xlu0 %v122_v18 }
 0x114   :  { %v121_v19 = vpop.xlane.xlu0 %120 }
 0x115   :  { %v129_v23 = vperm.slane %v121_v19, %v128_v21 }
 0x11c   :  { %v124_v22 = vpop.xlane.xlu0 %123 }
 0x11d   :  { %v130_v24 = vperm.slane %v124_v22, %v128_v21 }
 0x11f   :  { %v132_v25 = vsel %vm131_vm1, %v130_v24, %v129_v23 }
 0x120   :  { %135 = vst.msk [vmem:[#allocation8] sm:$0x3] %vm134_vm2, %v132_v25 }
 0x121   :  { %146 = dma.vmem_to_hbm [thread:$0]  %s142_s8, 32, %s144_s11, [#allocation4]  }
 0x122   :  { %275 = dma.done.wait [#allocation4], 32  }
 0x123   :  { %276 = vsyncadd [#allocation4], 4294967264 }
 0x124   :  { %151 = vsyncpa [#allocation3], 1 }
 0x125   :  { %152 = vsyncpa [#allocation6], 1 }
 0x126   :  { %153 = vsyncpa [#allocation4], 1 }

</bundles_post_ra>
